<compile_context>
chip_gen: v6e
topology: v6e:2x2x1
jax: 0.10.0
libtpu: 0.0.40
codegen_flags: <defaults>
</compile_context>

<pallas_src>
import jax
import jax.numpy as jnp
from jax.experimental import pallas as pl
from jax.experimental.pallas import tpu as pltpu


def _round_up(x, m):
    return (x + m - 1) // m * m


def _vmem_bytes(tm, tk, H, w_isz, x_isz, out_isz, wbuf):
    """Conservative working-set estimate for one grid step's pipeline."""
    act = 2 * tm * H * x_isz                      # x, double-buffered
    wts = wbuf * (2 * H * tk + tk * H) * w_isz    # gate + up + down tiles
    out = 2 * tm * H * out_isz                    # out, double-buffered
    acc = tm * H * 4                              # f32 accumulator scratch
    tmp = 3 * tm * tk * 4                         # gate/up/h f32 intermediates
    return act + wts + out + acc + tmp + (2 << 20)  # + fixed headroom


def _vmem_budget():
    try:
        cap = int(pltpu.get_tpu_info().vmem_capacity_bytes)
    except Exception:
        cap = 64 * 1024 * 1024  # conservative (v7x-sized) fallback
    return (cap * 8) // 10


def _pick_tm(T):
    """Largest token tile with <=~30% padding waste; else smallest tile."""
    for c in (1024, 512, 256, 128, 64, 32, 16):
        if _round_up(T, c) <= max((T * 13) // 10, 16):
            return c
    return 16


def prepare_qwen2_mlp_weights(w_gate, w_up, w_down):
    """One-time (weight-load time) preparation.

    w_gate / w_up: [H, I] (already transposed from the PyTorch [I, H] layout),
    w_down: [I, H].  Pads the intermediate dim to a multiple of 128 with zeros
    (zero gate/up columns and zero down rows contribute nothing).
    """
    H, I = w_gate.shape
    assert w_up.shape == (H, I) and w_down.shape == (I, H)
    Ip = _round_up(max(I, 128), 128)
    if Ip != I:
        w_gate = jnp.pad(w_gate, ((0, 0), (0, Ip - I)))
        w_up = jnp.pad(w_up, ((0, 0), (0, Ip - I)))
        w_down = jnp.pad(w_down, ((0, Ip - I), (0, 0)))
    return w_gate, w_up, w_down


def _qwen2_mlp_kernel(x_ref, wg_ref, wu_ref, wd_ref, out_ref, acc_ref):
    """gate/up projections + SiLU gating + down projection for one tile.

    Grid axis 1 is the reduction over intermediate-dim blocks; the output block
    stays resident across it and is accumulated in an f32 VMEM scratch.
    """
    k = pl.program_id(1)

    @pl.when(k == 0)
    def _():
        acc_ref[...] = jnp.zeros_like(acc_ref)

    x = x_ref[...]                                               # (tm, H)
    gate = jnp.dot(x, wg_ref[...], preferred_element_type=jnp.float32)
    up = jnp.dot(x, wu_ref[...], preferred_element_type=jnp.float32)
    h = jax.nn.silu(gate) * up                                   # f32 gating
    # Cast gated activation to the weight dtype before the down matmul;
    # accumulation stays f32.
    acc_ref[...] += jnp.dot(h.astype(wd_ref.dtype), wd_ref[...],
                            preferred_element_type=jnp.float32)

    @pl.when(k == pl.num_programs(1) - 1)
    def _():
        out_ref[...] = acc_ref[...].astype(out_ref.dtype)


@jax.jit
def qwen2_mlp(hidden_states, w_gate, w_up, w_down):
    """hidden_states: [T, H]; w_gate/w_up: [H, I_pad]; w_down: [I_pad, H]."""
    T, H = hidden_states.shape
    Hg, Ip = w_gate.shape
    assert Hg == H and w_up.shape == (H, Ip) and w_down.shape == (Ip, H)
    assert Ip % 128 == 0, "call prepare_qwen2_mlp_weights() once at load time"

    dtype = hidden_states.dtype
    x_isz = jnp.dtype(dtype).itemsize
    w_isz = jnp.dtype(w_gate.dtype).itemsize
    budget = int(_vmem_budget())

    # --- tile selection (trace time: shapes are static) ---
    tk_cands = [c for c in (512, 256, 128) if c <= Ip and Ip % c == 0] or [128]
    tm0 = _pick_tm(T)
    tm_list = [c for c in (1024, 512, 256, 128, 64, 32, 16) if c <= tm0] or [16]

    tm, tk = tm_list[-1], tk_cands[-1]
    for cm in tm_list:
        fitting = [ck for ck in tk_cands
                   if _vmem_bytes(cm, ck, H, w_isz, x_isz, 4, 2) <= budget]
        if fitting:
            tm, tk = cm, fitting[0]
            break

    Tp = _round_up(T, tm)
    x = hidden_states
    if Tp != T:
        x = jnp.pad(x, ((0, Tp - T), (0, 0)))

    grid_t = Tp // tm
    grid_k = Ip // tk

    # Decode regime (single token block): split the intermediate-dim reduction
    # across a leading "parallel" axis so both v7x TensorCores stream half the
    # weights each; partial f32 sums are combined outside the kernel.
    split_k = (grid_t == 1) and (grid_k >= 4) and (grid_k % 2 == 0)
    k_steps = (grid_k // 2) if split_k else grid_k

    # Deeper weight buffering only for decode-shaped streaming AND only if the
    # extra buffers fit the per-chip VMEM budget.
    wbuf3_ok = _vmem_bytes(tm, tk, H, w_isz, x_isz, 4, 3) <= budget
    wspec_kwargs = (dict(pipeline_mode=pl.Buffered(3))
                    if (grid_t == 1 and k_steps >= 3 and wbuf3_ok) else {})

    flops = 6 * Tp * H * Ip
    bytes_accessed = (2 * Tp * H * x_isz                       # x in, out
                      + grid_t * (3 * H * Ip) * w_isz)         # weight streams
    cost = pl.CostEstimate(flops=int(flops), transcendentals=int(Tp * Ip),
                           bytes_accessed=int(bytes_accessed))
    cparams = pltpu.CompilerParams(
        dimension_semantics=("parallel", "arbitrary"),
        vmem_limit_bytes=budget)

    if split_k:
        half = grid_k // 2
        partial = pl.pallas_call(
            _qwen2_mlp_kernel,
            out_shape=jax.ShapeDtypeStruct((2, Tp, H), jnp.float32),
            grid_spec=pltpu.PrefetchScalarGridSpec(
                num_scalar_prefetch=0,
                grid=(2, half),
                in_specs=[
                    pl.BlockSpec((Tp, H), lambda c, k: (0, 0)),
                    pl.BlockSpec((H, tk), lambda c, k: (0, c * half + k),
                                 **wspec_kwargs),
                    pl.BlockSpec((H, tk), lambda c, k: (0, c * half + k),
                                 **wspec_kwargs),
                    pl.BlockSpec((tk, H), lambda c, k: (c * half + k, 0),
                                 **wspec_kwargs),
                ],
                out_specs=pl.BlockSpec((None, Tp, H), lambda c, k: (c, 0, 0)),
                scratch_shapes=[pltpu.VMEM((Tp, H), jnp.float32)],
            ),
            compiler_params=cparams,
            cost_estimate=cost,
        )(x, w_gate, w_up, w_down)
        out = (partial[0] + partial[1]).astype(dtype)
    else:
        out = pl.pallas_call(
            _qwen2_mlp_kernel,
            out_shape=jax.ShapeDtypeStruct((Tp, H), dtype),
            grid_spec=pltpu.PrefetchScalarGridSpec(
                num_scalar_prefetch=0,
                grid=(grid_t, grid_k),
                in_specs=[
                    pl.BlockSpec((tm, H), lambda i, k: (i, 0)),
                    pl.BlockSpec((H, tk), lambda i, k: (0, k), **wspec_kwargs),
                    pl.BlockSpec((H, tk), lambda i, k: (0, k), **wspec_kwargs),
                    pl.BlockSpec((tk, H), lambda i, k: (k, 0), **wspec_kwargs),
                ],
                out_specs=pl.BlockSpec((tm, H), lambda i, k: (i, 0)),
                scratch_shapes=[pltpu.VMEM((tm, H), jnp.float32)],
            ),
            compiler_params=cparams,
            cost_estimate=cost,
        )(x, w_gate, w_up, w_down)

    if Tp != T:
        out = out[:T]
    return out


def qwen2_mlp_reference(hidden_states, w_gate, w_up, w_down):
    gate = hidden_states @ w_gate
    up = hidden_states @ w_up
    return (jax.nn.silu(gate) * up) @ w_down


if __name__ == "__main__":
    key = jax.random.PRNGKey(0)

    def make_inputs(k, T, H, I):
        kx, kg, ku, kd = jax.random.split(k, 4)
        x = jax.random.normal(kx, (T, H), dtype=jnp.float32).astype(jnp.bfloat16)
        wg = (jax.random.normal(kg, (H, I), dtype=jnp.float32) * 0.05
              ).astype(jnp.bfloat16)
        wu = (jax.random.normal(ku, (H, I), dtype=jnp.float32) * 0.05
              ).astype(jnp.bfloat16)
        wd = (jax.random.normal(kd, (I, H), dtype=jnp.float32) * 0.05
              ).astype(jnp.bfloat16)
        return x, wg, wu, wd

    k1, k2 = jax.random.split(key)

    # Case 1: small prefill-shaped problem (regular path).
    x, wg, wu, wd = make_inputs(k1, T=16, H=128, I=256)
    wg_p, wu_p, wd_p = prepare_qwen2_mlp_weights(wg, wu, wd)
    out = jax.block_until_ready(qwen2_mlp(x, wg_p, wu_p, wd_p))
    ref = qwen2_mlp_reference(x.astype(jnp.float32), wg.astype(jnp.float32),
                              wu.astype(jnp.float32), wd.astype(jnp.float32))
    assert out.shape == (16, 128)
    err = float(jnp.max(jnp.abs(out.astype(jnp.float32) - ref)))
    assert err < 5e-2, f"case 1 mismatch vs reference: max abs err {err}"

    # Case 2: decode-shaped problem (T=3, ragged) exercising the split-K path
    # (dual-TensorCore weight streaming on v7x; plain serial loop elsewhere).
    x, wg, wu, wd = make_inputs(k2, T=3, H=128, I=2048)
    wg_p, wu_p, wd_p = prepare_qwen2_mlp_weights(wg, wu, wd)
    out = jax.block_until_ready(qwen2_mlp(x, wg_p, wu_p, wd_p))
    ref = qwen2_mlp_reference(x.astype(jnp.float32), wg.astype(jnp.float32),
                              wu.astype(jnp.float32), wd.astype(jnp.float32))
    assert out.shape == (3, 128)
    err = float(jnp.max(jnp.abs(out.astype(jnp.float32) - ref)))
    assert err < 7.5e-2, f"case 2 mismatch vs reference: max abs err {err}"

    print("KERNEL_OK")
</pallas_src>

<mosaic_0001>
module attributes {stable_mosaic.version = 11 : i64} {
  func.func @_qwen2_mlp_kernel(%arg0: i32, %arg1: i32, %arg2: memref<16x128xbf16, #tpu.memory_space<vmem>>, %arg3: memref<128x256xbf16, #tpu.memory_space<vmem>>, %arg4: memref<128x256xbf16, #tpu.memory_space<vmem>>, %arg5: memref<256x128xbf16, #tpu.memory_space<vmem>>, %arg6: memref<16x128xbf16, #tpu.memory_space<vmem>>, %arg7: memref<16x128xf32, #tpu.memory_space<vmem>>) attributes {dimension_semantics = [#tpu.dimension_semantics<parallel>, #tpu.dimension_semantics<arbitrary>], iteration_bounds = array<i64: 1, 1>, scalar_prefetch = 0 : i64, scratch_operands = 1 : i64, tpu.core_type = #tpu.core_type<tc>, window_params = [{transform_indices = @transform_0, window_bounds = array<i64: 16, 128>}, {transform_indices = @transform_1, window_bounds = array<i64: 128, 256>}, {transform_indices = @transform_2, window_bounds = array<i64: 128, 256>}, {transform_indices = @transform_3, window_bounds = array<i64: 256, 128>}, {transform_indices = @transform_4, window_bounds = array<i64: 16, 128>}]} {
    %c0_i32 = arith.constant 0 : i32
    %0 = arith.cmpi eq, %arg1, %c0_i32 : i32
    %1 = arith.extui %0 : i1 to i32
    %c0_i32_0 = arith.constant 0 : i32
    %2 = arith.cmpi ne, %1, %c0_i32_0 : i32
    scf.if %2 {
      %cst_17 = arith.constant 0.000000e+00 : f32
      %24 = vector.broadcast %cst_17 : f32 to vector<16x128xf32>
      %c0_18 = arith.constant 0 : index
      %c0_19 = arith.constant 0 : index
      %25 = vector.load %arg7[%c0_18, %c0_19] : memref<16x128xf32, #tpu.memory_space<vmem>>, vector<16x128xf32>
      tpu.vector_store %arg7[%c0_18, %c0_19], %24 {strides = array<i32>} : memref<16x128xf32, #tpu.memory_space<vmem>>, vector<16x128xf32>,
    } else {
    }
    %c0 = arith.constant 0 : index
    %c0_1 = arith.constant 0 : index
    %3 = vector.load %arg2[%c0, %c0_1] : memref<16x128xbf16, #tpu.memory_space<vmem>>, vector<16x128xbf16>
    %c0_2 = arith.constant 0 : index
    %c0_3 = arith.constant 0 : index
    %4 = vector.load %arg3[%c0_2, %c0_3] : memref<128x256xbf16, #tpu.memory_space<vmem>>, vector<128x256xbf16>
    %cst = arith.constant dense<0.000000e+00> : vector<16x256xf32>
    %5 = tpu.matmul %3, %4, %cst {dimension_numbers = #tpu.dot_dimension_numbers<[1], [0], [0], [1], [0, 0, 1, 1], [], []>} : vector<16x128xbf16>, vector<128x256xbf16>, vector<16x256xf32> -> vector<16x256xf32>
    %c0_4 = arith.constant 0 : index
    %c0_5 = arith.constant 0 : index
    %6 = vector.load %arg4[%c0_4, %c0_5] : memref<128x256xbf16, #tpu.memory_space<vmem>>, vector<128x256xbf16>
    %cst_6 = arith.constant dense<0.000000e+00> : vector<16x256xf32>
    %7 = tpu.matmul %3, %6, %cst_6 {dimension_numbers = #tpu.dot_dimension_numbers<[1], [0], [0], [1], [0, 0, 1, 1], [], []>} : vector<16x128xbf16>, vector<128x256xbf16>, vector<16x256xf32> -> vector<16x256xf32>
    %8 = arith.negf %5 : vector<16x256xf32>
    %9 = math.exp %8 : vector<16x256xf32>
    %cst_7 = arith.constant 1.000000e+00 : f32
    %10 = vector.broadcast %cst_7 : f32 to vector<16x256xf32>
    %11 = arith.addf %10, %9 : vector<16x256xf32>
    %12 = arith.divf %10, %11 : vector<16x256xf32>
    %13 = arith.mulf %5, %12 : vector<16x256xf32>
    %14 = arith.mulf %13, %7 : vector<16x256xf32>
    %c0_8 = arith.constant 0 : index
    %c0_9 = arith.constant 0 : index
    %15 = vector.load %arg7[%c0_8, %c0_9] : memref<16x128xf32, #tpu.memory_space<vmem>>, vector<16x128xf32>
    %16 = arith.truncf %14 : vector<16x256xf32> to vector<16x256xbf16>
    %c0_10 = arith.constant 0 : index
    %c0_11 = arith.constant 0 : index
    %17 = vector.load %arg5[%c0_10, %c0_11] : memref<256x128xbf16, #tpu.memory_space<vmem>>, vector<256x128xbf16>
    %cst_12 = arith.constant dense<0.000000e+00> : vector<16x128xf32>
    %18 = tpu.matmul %16, %17, %cst_12 {dimension_numbers = #tpu.dot_dimension_numbers<[1], [0], [0], [1], [0, 0, 1, 1], [], []>} : vector<16x256xbf16>, vector<256x128xbf16>, vector<16x128xf32> -> vector<16x128xf32>
    %19 = arith.addf %15, %18 : vector<16x128xf32>
    %c0_13 = arith.constant 0 : index
    %c0_14 = arith.constant 0 : index
    %20 = vector.load %arg7[%c0_13, %c0_14] : memref<16x128xf32, #tpu.memory_space<vmem>>, vector<16x128xf32>
    tpu.vector_store %arg7[%c0_13, %c0_14], %19 {strides = array<i32>} : memref<16x128xf32, #tpu.memory_space<vmem>>, vector<16x128xf32>,
    %c0_i32_15 = arith.constant 0 : i32
    %21 = arith.cmpi eq, %arg1, %c0_i32_15 : i32
    %22 = arith.extui %21 : i1 to i32
    %c0_i32_16 = arith.constant 0 : i32
    %23 = arith.cmpi ne, %22, %c0_i32_16 : i32
    scf.if %23 {
      %c0_17 = arith.constant 0 : index
      %c0_18 = arith.constant 0 : index
      %24 = vector.load %arg7[%c0_17, %c0_18] : memref<16x128xf32, #tpu.memory_space<vmem>>, vector<16x128xf32>
      %25 = arith.truncf %24 : vector<16x128xf32> to vector<16x128xbf16>
      %c0_19 = arith.constant 0 : index
      %c0_20 = arith.constant 0 : index
      %26 = vector.load %arg6[%c0_19, %c0_20] : memref<16x128xbf16, #tpu.memory_space<vmem>>, vector<16x128xbf16>
      tpu.vector_store %arg6[%c0_19, %c0_20], %25 {strides = array<i32>} : memref<16x128xbf16, #tpu.memory_space<vmem>>, vector<16x128xbf16>,
    } else {
    }
    return
  }
  func.func @transform_0(%arg0: i32, %arg1: i32) -> (i32, i32) {
    %c0_i32 = arith.constant 0 : i32
    %c0_i32_0 = arith.constant 0 : i32
    return %arg0, %c0_i32 : i32, i32
  }
  func.func @transform_1(%arg0: i32, %arg1: i32) -> (i32, i32) {
    %c0_i32 = arith.constant 0 : i32
    %c0_i32_0 = arith.constant 0 : i32
    return %c0_i32, %arg1 : i32, i32
  }
  func.func @transform_2(%arg0: i32, %arg1: i32) -> (i32, i32) {
    %c0_i32 = arith.constant 0 : i32
    %c0_i32_0 = arith.constant 0 : i32
    return %c0_i32, %arg1 : i32, i32
  }
  func.func @transform_3(%arg0: i32, %arg1: i32) -> (i32, i32) {
    %c0_i32 = arith.constant 0 : i32
    %c0_i32_0 = arith.constant 0 : i32
    return %arg1, %c0_i32 : i32, i32
  }
  func.func @transform_4(%arg0: i32, %arg1: i32) -> (i32, i32) {
    %c0_i32 = arith.constant 0 : i32
    %c0_i32_0 = arith.constant 0 : i32
    return %arg0, %c0_i32 : i32, i32
  }
}

</mosaic_0001>

<bundles_post_ra>
// kernel: qwen2_mlp.1
= control target key start
LH: loop header
LB: loop body
LE: loop exit
PB: predicated region body
PF: predicated region fallthrough
CT: control target
= control target key end

     0   :  { %9 = vsyncpa [#allocation4], 0  ;;  %s957_s0 = inlined_call_operand.hbm [shape: bf16[16,128], index: 0, kind: input, shape index: {}]   ;;  %s958_s1 = inlined_call_operand.hbm [shape: bf16[128,256], index: 1, kind: input, shape index: {}]   ;;  %s959_s2 = inlined_call_operand.hbm [shape: bf16[128,256], index: 2, kind: input, shape index: {}]   ;;  %s960_s3 = inlined_call_operand.hbm [shape: bf16[256,128], index: 3, kind: input, shape index: {}]   ;;  %s961_s4 = inlined_call_operand.hbm [shape: bf16[16,128], index: 4, kind: output, shape index: {}]  }
   0x1   :  { %10 = vsyncpa [#allocation7], 0 }
   0x2   :  { %11 = vsyncpa [#allocation10], 0 }
   0x3   :  { %12 = vsyncpa [#allocation5], 0  ;;  %s892_s15 = smov [#allocation6]  }
   0x4   :  { %s30_s16 = sshll.u32 %s892_s15, 4  ;;  %s31_s16 = int_to_ptr.vmem [resolvable:$true] %s30_s16 }
   0x5   :  { %s792_s17 = scalar_lea.vmem %s31_s16, 2048  ;;  %p797_p1 = scmp.lt.s32.totalorder %s31_s16, %s31_s16 }
   0x6   :  { %p793_p0 = scmp.ne.s32.totalorder %s31_s16, %s792_s17  ;;  %p798_p2 = scmp.lt.s32.totalorder %s792_s17, %s792_s17 }
   0x8   :  { %p799_p3 = por %p798_p2, %p797_p1 }
   0xa   :  { %p800_p4 = pnand %p799_p3, %p793_p0 }
   0xc   :  { %803 = shalt.err (!%p800_p4)
}
   0xd   :  { %s893_s18 = smov 128   ;;  %s894_s19 = smov 8  }
   0xe   :  { %36 = dma.hbm_to_vmem [thread:$0]  %s958_s1, 2048, %s31_s16, [#allocation7], %s893_s18, %s893_s18, %s894_s19  }
   0xf   :  { %s895_s22 = smov [#allocation3]  }
  0x10   :  { %s18_s23 = sshll.u32 %s895_s22, 4  ;;  %s19_s23 = int_to_ptr.vmem [resolvable:$true] %s18_s23 }
  0x11   :  { %s812_s24 = scalar_lea.vmem %s19_s23, 128  ;;  %p817_p6 = scmp.lt.s32.totalorder %s19_s23, %s19_s23 }
  0x12   :  { %p813_p5 = scmp.ne.s32.totalorder %s19_s23, %s812_s24  ;;  %p818_p7 = scmp.lt.s32.totalorder %s812_s24, %s812_s24 }
  0x14   :  { %p819_p8 = por %p818_p7, %p817_p6 }
  0x16   :  { %p820_p9 = pnand %p819_p8, %p813_p5 }
  0x18   :  { %823 = shalt.err (!%p820_p9)
}
  0x19   :  { %s896_s25 = smov 64   ;;  %s897_s26 = smov 4  }
  0x1a   :  { %24 = dma.hbm_to_vmem [thread:$0]  %s957_s0, 128, %s19_s23, [#allocation4], %s896_s25, %s896_s25, %s897_s26  }
  0x1b   :  { %s898_s1 = smov [#allocation8]   ;;  %s899_s30 = smov [#allocation9]  }
  0x1c   :  { %s42_s29 = sshll.u32 %s898_s1, 4  ;;  %s54_s5 = sshll.u32 %s899_s30, 4  ;;  %s43_s29 = int_to_ptr.vmem [resolvable:$true] %s42_s29  ;;  %s55_s5 = int_to_ptr.vmem [resolvable:$true] %s54_s5 }
  0x1d   :  { %s832_s6 = scalar_lea.vmem %s43_s29, 2048  ;;  %p837_p11 = scmp.lt.s32.totalorder %s43_s29, %s43_s29 }
  0x1e   :  { %p833_p10 = scmp.ne.s32.totalorder %s43_s29, %s832_s6  ;;  %p838_p12 = scmp.lt.s32.totalorder %s832_s6, %s832_s6 }
  0x20   :  { %p839_p13 = por %p838_p12, %p837_p11 }
  0x22   :  { %p840_p0 = pnand %p839_p13, %p833_p10 }
  0x24   :  { %843 = shalt.err (!%p840_p0)
}
  0x25   :  { %48 = dma.hbm_to_vmem [thread:$0]  %s959_s2, 2048, %s43_s29, [#allocation7], %s893_s18, %s893_s18, %s894_s19  }
  0x26   :  { %s852_s0 = scalar_lea.vmem %s55_s5, 2048  ;;  %p857_p2 = scmp.lt.s32.totalorder %s55_s5, %s55_s5 }
  0x27   :  { %p853_p1 = scmp.ne.s32.totalorder %s55_s5, %s852_s0  ;;  %p858_p3 = scmp.lt.s32.totalorder %s852_s0, %s852_s0 }
  0x29   :  { %p859_p4 = por %p858_p3, %p857_p2 }
  0x2b   :  { %p860_p5 = pnand %p859_p4, %p853_p1 }
  0x2d   :  { %863 = shalt.err (!%p860_p5)
}
  0x2e   :  { %60 = dma.hbm_to_vmem [thread:$0]  %s960_s3, 2048, %s55_s5, [#allocation10], %s896_s25, %s896_s25, %s897_s26  }
  0x2f   :  { %884 = dma.done.wait [#allocation4], 128  }
  0x30   :  { %885 = vsyncadd [#allocation4], 4294967168 }
  0x31   :  { %886 = dma.done.wait [#allocation7], 4096  }
  0x32   :  { %887 = vsyncadd [#allocation7], 4294963200 }
  0x33   :  { %888 = dma.done.wait [#allocation10], 2048  }
  0x34   :  { %889 = vsyncadd [#allocation10], 4294965248  ;;  %v900_v0 = vmov 0   ;;  %v703_v1 = vld [vmem:[#allocation6 + $0x74] ss:$8 sps:$4 sm:$0xff]   ;;  %v756_v38 = vld [vmem:[#allocation9 + $0x68] sm:$0xff]  }
  0x35   :  { %216 = vmatprep.mubr.bf16.mxu0 %v900_v0  ;;  %355 = vmatprep.mubr.bf16.mxu1 %v900_v0  ;;  %v705_v2 = vld [vmem:[#allocation6 + $0x70] ss:$8 sps:$4 sm:$0xff]   ;;  %v706_v3 = vld [vmem:[#allocation6 + $0x64] ss:$8 sps:$4 sm:$0xff]   ;;  %v708_v4 = vld [vmem:[#allocation6 + $0x60] ss:$8 sps:$4 sm:$0xff]  }
  0x36   :  { %184 = vmatprep.subr.bf16.mxu0 %v703_v1  ;;  %v709_v5 = vld [vmem:[#allocation6 + $0x54] ss:$8 sps:$4 sm:$0xff]   ;;  %v711_v6 = vld [vmem:[#allocation6 + $0x50] ss:$8 sps:$4 sm:$0xff]   ;;  %v712_v7 = vld [vmem:[#allocation6 + $0x44] ss:$8 sps:$4 sm:$0xff]  }
  0x37   :  { %185 = vmatpush1.bf16.msra.mxu0 %v705_v2  ;;  %v714_v8 = vld [vmem:[#allocation6 + $0x40] ss:$8 sps:$4 sm:$0xff]   ;;  %v726_v9 = vld [vmem:[#allocation8 + $0x74] ss:$8 sps:$4 sm:$0xff]   ;;  %v729_v10 = vld [vmem:[#allocation8 + $0x70] ss:$8 sps:$4 sm:$0xff]  }
  0x38   :  { %186 = vmatprep.subr.bf16.mxu0 %v706_v3  ;;  %v715_v11 = vld [vmem:[#allocation6 + $0x34] ss:$8 sps:$4 sm:$0xff]   ;;  %323 = vmatprep.subr.bf16.mxu1 %v726_v9  ;;  %v731_v12 = vld [vmem:[#allocation8 + $0x64] ss:$8 sps:$4 sm:$0xff]   ;;  %v733_v13 = vld [vmem:[#allocation8 + $0x60] ss:$8 sps:$4 sm:$0xff]  }
  0x39   :  { %324 = vmatpush1.bf16.msra.mxu1 %v729_v10  ;;  %v717_v14 = vld [vmem:[#allocation6 + $0x30] ss:$8 sps:$4 sm:$0xff]   ;;  %v734_v15 = vld [vmem:[#allocation8 + $0x54] ss:$8 sps:$4 sm:$0xff]   ;;  %v718_v16 = vld [vmem:[#allocation6 + $0x24] ss:$8 sps:$4 sm:$0xff]  }
  0x3a   :  { %325 = vmatprep.subr.bf16.mxu1 %v731_v12  ;;  %v736_v17 = vld [vmem:[#allocation8 + $0x50] ss:$8 sps:$4 sm:$0xff]   ;;  %v720_v18 = vld [vmem:[#allocation6 + $0x20] ss:$8 sps:$4 sm:$0xff]   ;;  %v737_v19 = vld [vmem:[#allocation8 + $0x44] ss:$8 sps:$4 sm:$0xff]  }
  0x3b   :  { %187 = vmatpush1.bf16.msra.mxu0 %v708_v4  ;;  %v721_v20 = vld [vmem:[#allocation6 + $0x14] ss:$8 sps:$4 sm:$0xff]   ;;  %v723_v21 = vld [vmem:[#allocation6 + $0x10] ss:$8 sps:$4 sm:$0xff]   ;;  %v739_v22 = vld [vmem:[#allocation8 + $0x40] ss:$8 sps:$4 sm:$0xff]  }
  0x3c   :  { %188 = vmatprep.subr.bf16.mxu0 %v709_v5  ;;  %v724_v23 = vld [vmem:[#allocation6 + $0x4] ss:$8 sps:$4 sm:$0xff]   ;;  %v740_v24 = vld [vmem:[#allocation8 + $0x34] ss:$8 sps:$4 sm:$0xff]   ;;  %v742_v25 = vld [vmem:[#allocation8 + $0x30] ss:$8 sps:$4 sm:$0xff]  }
  0x3d   :  { %326 = vmatpush1.bf16.msra.mxu1 %v733_v13  ;;  %v728_v26 = vld [vmem:[#allocation6] ss:$8 sps:$4 sm:$0xff]   ;;  %v743_v27 = vld [vmem:[#allocation8 + $0x24] ss:$8 sps:$4 sm:$0xff]   ;;  %v730_v28 = vld [vmem:[#allocation3] sm:$0xff]   ;;  %s901_s2 = smov [#allocation11]  }
  0x3e   :  { %327 = vmatprep.subr.bf16.mxu1 %v734_v15  ;;  %v745_v29 = vld [vmem:[#allocation8 + $0x20] ss:$8 sps:$4 sm:$0xff]   ;;  %v746_v30 = vld [vmem:[#allocation8 + $0x14] ss:$8 sps:$4 sm:$0xff]   ;;  %v748_v31 = vld [vmem:[#allocation8 + $0x10] ss:$8 sps:$4 sm:$0xff]  }
  0x3f   :  { %189 = vmatpush1.bf16.msra.mxu0 %v711_v6  ;;  %v749_v32 = vld [vmem:[#allocation8 + $0x4] ss:$8 sps:$4 sm:$0xff]   ;;  %v751_v33 = vld [vmem:[#allocation8] ss:$8 sps:$4 sm:$0xff]   ;;  %v752_v34 = vld [vmem:[#allocation9 + $0x78] sm:$0xff]   ;;  %s595_s3 = sshll.u32 %s901_s2, 4  ;;  %s596_s3 = int_to_ptr.vmem [resolvable:$true] %s595_s3 }
  0x40   :  { %190 = vmatprep.subr.bf16.mxu0 %v712_v7  ;;  %v753_v35 = vld [vmem:[#allocation9 + $0x38] sm:$0xff]   ;;  %v754_v36 = vld [vmem:[#allocation9 + $0x70] sm:$0xff]   ;;  %v757_v39 = vld [vmem:[#allocation9 + $0x28] sm:$0xff]   ;;  %s864_s11 = scalar_lea.vmem %s596_s3, 128  ;;  %p869_p7 = scmp.lt.s32.totalorder %s596_s3, %s596_s3 }
  0x41   :  { %328 = vmatpush1.bf16.msra.mxu1 %v736_v17  ;;  %v755_v37 = vld [vmem:[#allocation9 + $0x30] sm:$0xff]   ;;  %v758_v40 = vld [vmem:[#allocation9 + $0x60] sm:$0xff]   ;;  %v760_v42 = vld [vmem:[#allocation9 + $0x58] sm:$0xff]   ;;  %p865_p6 = scmp.ne.s32.totalorder %s596_s3, %s864_s11  ;;  %p870_p8 = scmp.lt.s32.totalorder %s864_s11, %s864_s11 }
  0x42   :  { %329 = vmatprep.subr.bf16.mxu1 %v737_v19  ;;  %v759_v41 = vld [vmem:[#allocation9 + $0x20] sm:$0xff]   ;;  %v761_v43 = vld [vmem:[#allocation9 + $0x18] sm:$0xff]   ;;  %v762_v44 = vld [vmem:[#allocation9 + $0x50] sm:$0xff]  }
  0x43   :  { %191 = vmatpush1.bf16.msra.mxu0 %v714_v8  ;;  %v763_v45 = vld [vmem:[#allocation9 + $0x10] sm:$0xff]   ;;  %v764_v46 = vld [vmem:[#allocation9 + $0x48] sm:$0xff]   ;;  %v766_v48 = vld [vmem:[#allocation9 + $0x40] sm:$0xff]   ;;  %p871_p9 = por %p870_p8, %p869_p7 }
  0x44   :  { %192 = vmatprep.subr.bf16.mxu0 %v715_v11  ;;  %v765_v47 = vld [vmem:[#allocation9 + $0x8] sm:$0xff]   ;;  %v767_v49 = vld [vmem:[#allocation9] sm:$0xff]  }
  0x45   :  { %330 = vmatpush1.bf16.msra.mxu1 %v739_v22  ;;  %p872_p10 = pnand %p871_p9, %p865_p6 }
  0x46   :  { %331 = vmatprep.subr.bf16.mxu1 %v740_v24 }
  0x47   :  { %193 = vmatpush1.bf16.msra.mxu0 %v717_v14 }
  0x48   :  { %194 = vmatprep.subr.bf16.mxu0 %v718_v16 }
  0x49   :  { %332 = vmatpush1.bf16.msra.mxu1 %v742_v25 }
  0x4a   :  { %333 = vmatprep.subr.bf16.mxu1 %v743_v27 }
  0x4b   :  { %195 = vmatpush1.bf16.msra.mxu0 %v720_v18 }
  0x4c   :  { %196 = vmatprep.subr.bf16.mxu0 %v721_v20 }
  0x4d   :  { %334 = vmatpush1.bf16.msra.mxu1 %v745_v29 }
  0x4e   :  { %335 = vmatprep.subr.bf16.mxu1 %v746_v30 }
  0x4f   :  { %197 = vmatpush1.bf16.msra.mxu0 %v723_v21 }
  0x50   :  { %198 = vmatprep.subr.bf16.mxu0 %v724_v23 }
  0x51   :  { %336 = vmatpush1.bf16.msra.mxu1 %v748_v31 }
  0x52   :  { %337 = vmatprep.subr.bf16.mxu1 %v749_v32 }
  0x53   :  { %199 = vmatpush1.bf16.msra.mxu0 %v728_v26 }
  0x54   :  { %671 = vmatprep.subr.bf16.mxu0 %v752_v34 }
  0x55   :  { %338 = vmatpush1.bf16.msra.mxu1 %v751_v33 }
  0x56   :  { %217 = vmatmul.mubr.bf16.vlgmr.msra.gmra.mxu0 %v730_v28 }
  0x57   :  { %672 = vmatpush3.bf16.msra.mxu0 %v753_v35 }
  0x58   :  { %356 = vmatmul.mubr.bf16.vlgmr.msra.gmra.mxu1 %v730_v28  ;;  %673 = vmatprep.subr.bf16.mxu0 %v754_v36 }
  0x5b   :  { %674 = vmatpush3.bf16.msra.mxu0 %v755_v37 }
  0x5c   :  { %675 = vmatprep.subr.bf16.mxu0 %v756_v38 }
  0x5f   :  { %676 = vmatpush3.bf16.msra.mxu0 %v757_v39 }
  0x60   :  { %677 = vmatprep.subr.bf16.mxu0 %v758_v40 }
  0x63   :  { %678 = vmatpush3.bf16.msra.mxu0 %v759_v41 }
  0x64   :  { %679 = vmatprep.subr.bf16.mxu0 %v760_v42 }
  0x67   :  { %680 = vmatpush3.bf16.msra.mxu0 %v761_v43 }
  0x68   :  { %681 = vmatprep.subr.bf16.mxu0 %v762_v44 }
  0x6b   :  { %682 = vmatpush3.bf16.msra.mxu0 %v763_v45 }
  0x6c   :  { %683 = vmatprep.subr.bf16.mxu0 %v764_v46 }
  0x6f   :  { %684 = vmatpush3.bf16.msra.mxu0 %v765_v47 }
  0x70   :  { %685 = vmatprep.subr.bf16.mxu0 %v766_v48 }
  0x73   :  { %686 = vmatpush3.bf16.msra.mxu0 %v767_v49 }
 0x116   :  { %v218_v50 = vpop.f32.mrf.mxu0 }
 0x117   :  { %v642_v51 = vmul.f32 -1.442695, %v218_v50 }
 0x118   :  { %v220_v52 = vpop.f32.mrf.mxu0  ;;  %v357_v2 = vpop.f32.mrf.mxu1 }
 0x119   :  { %768 = vpow2.f32 %v642_v51  ;;  %v643_v53 = vmul.f32 -1.442695, %v220_v52 }
 0x11a   :  { %v222_v54 = vpop.f32.mrf.mxu0  ;;  %v359_v3 = vpop.f32.mrf.mxu1 }
 0x11b   :  { %770 = vpow2.f32 %v643_v53  ;;  %v644_v55 = vmul.f32 -1.442695, %v222_v54 }
 0x11c   :  { %v224_v56 = vpop.f32.mrf.mxu0  ;;  %v361_v7 = vpop.f32.mrf.mxu1 }
 0x11d   :  { %772 = vpow2.f32 %v644_v55  ;;  %v645_v57 = vmul.f32 -1.442695, %v224_v56 }
 0x11e   :  { %v363_v14 = vpop.f32.mrf.mxu1 }
 0x11f   :  { %774 = vpow2.f32 %v645_v57 }
 0x126   :  { %v769_v58 = vpop.eup %768 }
 0x127   :  { %v378_v60 = vadd.f32 1.0, %v769_v58 }
 0x128   :  { %v771_v59 = vpop.eup %770 }
 0x129   :  { %v379_v61 = vadd.f32 1.0, %v771_v59 }
 0x12a   :  { %v773_v62 = vpop.eup %772 }
 0x12b   :  { %776 = vrcp.f32 %v379_v61  ;;  %v380_v63 = vadd.f32 1.0, %v773_v62 }
 0x12c   :  { %v775_v0 = vpop.eup %774  ;;  %778 = vrcp.f32 %v378_v60 }
 0x12d   :  { %780 = vrcp.f32 %v380_v63  ;;  %v381_v1 = vadd.f32 1.0, %v775_v0 }
 0x12f   :  { %782 = vrcp.f32 %v381_v1 }
 0x138   :  { %v777_v4 = vpop.eup %776 }
 0x139   :  { %v779_v5 = vpop.eup %778  ;;  %v391_v8 = vmul.f32 %v777_v4, %v220_v52 }
 0x13a   :  { %v781_v6 = vpop.eup %780  ;;  %v390_v11 = vmul.f32 %v779_v5, %v218_v50 }
 0x13b   :  { %v392_v9 = vmul.f32 %v781_v6, %v222_v54  ;;  %v395_v15 = vmul.f32 %v391_v8, %v359_v3 }
 0x13c   :  { %v783_v10 = vpop.eup %782  ;;  %v394_v17 = vmul.f32 %v390_v11, %v357_v2 }
 0x13d   :  { %v393_v12 = vmul.f32 %v783_v10, %v224_v56  ;;  %v396_v13 = vmul.f32 %v392_v9, %v361_v7 }
 0x13f   :  { %v397_v16 = vmul.f32 %v393_v12, %v363_v14  ;;  %v400_v19 = vpack.c.bf16 %v396_v13, %v394_v17 }
 0x141   :  { %v401_v18 = vpack.c.bf16 %v397_v16, %v395_v15 }
 0x143   :  { %562 = vmatprep.mubr.bf16.mxu0 %v401_v18 }
 0x144   :  { %563 = vmatmul.mubr.bf16.vlgmr.msra.gmra.mxu0 %v400_v19 }
 0x204   :  { %v687_v20 = vpop.f32.mrf.mxu0 }
 0x206   :  { %v688_v21 = vpop.f32.mrf.mxu0 }
 0x207   :  { %v689_v24 = vadd.f32 %v688_v21, %v687_v20 }
 0x208   :  { %v690_v22 = vpop.f32.mrf.mxu0 }
 0x20a   :  { %v691_v23 = vpop.f32.mrf.mxu0 }
 0x20b   :  { %v692_v25 = vadd.f32 %v691_v23, %v690_v22 }
 0x20d   :  { %v669_v26 = vpack.c.bf16 %v692_v25, %v689_v24 }
 0x20f   :  { %670 = vst [vmem:[#allocation11] sm:$0xff] %v669_v26  }
 0x210   :  { %875 = shalt.err (!%p872_p10)
}
 0x211   :  { %601 = dma.vmem_to_hbm [thread:$0]  %s596_s3, 128, %s961_s4, [#allocation5], %s896_s25, %s896_s25, %s897_s26  }
 0x212   :  { %890 = dma.done.wait [#allocation5], 128  }
 0x213   :  { %891 = vsyncadd [#allocation5], 4294967168 }
 0x214   :  { %605 = vsyncpa [#allocation4], 1 }
 0x215   :  { %606 = vsyncpa [#allocation7], 1 }
 0x216   :  { %607 = vsyncpa [#allocation10], 1 }
 0x217   :  { %608 = vsyncpa [#allocation5], 1 }

</bundles_post_ra>
